<compile_context>
chip_gen: v7x
topology: tpu7x:2x2x1
jax: 0.10.0
libtpu: 0.0.40
codegen_flags: <defaults>
</compile_context>

<pallas_src>
import functools

import jax
import jax.numpy as jnp
from jax.experimental import pallas as pl
from jax.experimental.pallas import tpu as pltpu

LANE = 128     # TPU lane width
SUBLANE = 8    # f32 sublane count


def _round_up(x, m):
    return (x + m - 1) // m * m


def _actor_mlp_kernel(*refs, num_layers):
    """refs = (x, w0, b0, w1, b1, ..., w_{L-1}, b_{L-1}, out).

    Hidden layers: Linear -> ReLU (bf16 activations between layers).
    Final layer:   Linear -> tanh (f32 epilogue, padded lanes are tanh(0)=0).
    """
    x_ref = refs[0]
    o_ref = refs[-1]
    wb = refs[1:-1]

    h = x_ref[...].astype(jnp.bfloat16)        # cast once; stays on-chip
    for layer in range(num_layers):            # statically unrolled
        w_ref = wb[2 * layer]                  # (in, out) bf16, VMEM-resident
        b_ref = wb[2 * layer + 1]              # (1, out)  f32
        # MXU matmul: bf16 operands, f32 accumulation; bias add on the VPU.
        y = jnp.dot(h, w_ref[...], preferred_element_type=jnp.float32) + b_ref[...]
        if layer < num_layers - 1:
            h = jnp.maximum(y, 0.0).astype(jnp.bfloat16)   # ReLU, back to bf16
        else:
            # tanh(0) == 0 => zero-padded output lanes stay zero (wrapper slices).
            o_ref[...] = jnp.tanh(y).astype(o_ref.dtype)   # EUP tanh, f32 store


def prepare_actor_params(params):
    """One-time parameter preparation (run OUTSIDE the per-step jit).

    params: list of (w[in, out], b[out]) with w already transposed relative to
    PyTorch's (out, in) storage, so the kernel computes y = x @ w + b.

    Returns (flat_inputs, output_size) where flat_inputs is
    (w0_bf16, b0_f32_1xN, w1_bf16, b1_f32_1xN, ...) with the last layer
    zero-padded to a lane-dense (multiple-of-128) output width.
    """
    num_layers = len(params)
    output_size = params[-1][0].shape[1]
    padded_out = _round_up(output_size, LANE)

    flat = []
    for i, (w, b) in enumerate(params):
        if i == num_layers - 1 and padded_out != output_size:
            pad = padded_out - output_size
            w = jnp.pad(w, ((0, 0), (0, pad)))   # zero columns -> zero logits
            b = jnp.pad(b, (0, pad))             # zero bias   -> tanh(0) = 0
        flat.append(jnp.asarray(w, jnp.bfloat16))                 # halve weight DMA
        flat.append(jnp.asarray(b, jnp.float32).reshape(1, -1))   # (1, out) f32
    return tuple(flat), output_size


@functools.partial(jax.jit, static_argnames=("output_size", "block_m"))
def actor_forward(prepared, states, *, output_size, block_m=512):
    """Fused forward for the whole Actor MLP.

    prepared: output of prepare_actor_params (weights already bf16 / padded).
    states:   (batch, input_size) f32.
    """
    batch, in_size = states.shape
    num_layers = len(prepared) // 2
    padded_out = prepared[-1].shape[1]

    # Row tile: multiple of 8, capped at block_m; pad batch to a multiple of it.
    bm = min(block_m, _round_up(batch, SUBLANE))
    padded_batch = _round_up(batch, bm)
    if padded_batch != batch:
        states = jnp.pad(states, ((0, padded_batch - batch), (0, 0)))
    states = states.astype(jnp.float32)

    grid = (padded_batch // bm,)

    # Activations stream per grid step; weights/biases stay VMEM-resident
    # (constant block index => DMA'd once, no re-fetch across steps).
    in_specs = [pl.BlockSpec((bm, in_size), lambda i: (i, 0))]
    for arr in prepared:
        in_specs.append(pl.BlockSpec(arr.shape, lambda i: (0, 0)))
    out_specs = pl.BlockSpec((bm, padded_out), lambda i: (i, 0))

    flops = 0
    for l in range(num_layers):
        w = prepared[2 * l]
        flops += 2 * padded_batch * w.shape[0] * w.shape[1]
    bytes_accessed = (states.size * 4
                      + sum(a.size * a.dtype.itemsize for a in prepared)
                      + padded_batch * padded_out * 4)

    kernel = functools.partial(_actor_mlp_kernel, num_layers=num_layers)
    out_padded = pl.pallas_call(
        kernel,
        out_shape=jax.ShapeDtypeStruct((padded_batch, padded_out), jnp.float32),
        grid=grid,
        in_specs=in_specs,
        out_specs=out_specs,
        compiler_params=pltpu.CompilerParams(
            dimension_semantics=("parallel",)),   # both TCs on v7x at large batch
        cost_estimate=pl.CostEstimate(
            flops=int(flops),
            transcendentals=int(padded_batch * padded_out),
            bytes_accessed=int(bytes_accessed)),
    )(states, *prepared)

    return out_padded[:batch, :output_size]


def init_actor_params(key, input_size, output_size, hidden_layers, units):
    """Deterministic init matching PyTorch nn.Linear shapes.

    PyTorch stores weight as (out, in); we store the transpose (in, out).
    """
    dims = [input_size] + [units] * hidden_layers + [output_size]
    params = []
    for i in range(len(dims) - 1):
        fan_in, fan_out = dims[i], dims[i + 1]
        key, kw, kb = jax.random.split(key, 3)
        bound = 1.0 / (fan_in ** 0.5)
        w = jax.random.uniform(kw, (fan_in, fan_out), jnp.float32, -bound, bound)
        b = jax.random.uniform(kb, (fan_out,), jnp.float32, -bound, bound)
        params.append((w, b))
    return params


def actor_reference_f32(params, states):
    """Pure-JAX f32 reference (exact PyTorch semantics)."""
    vals = states
    for w, b in params[:-1]:
        vals = jnp.maximum(vals @ w + b, 0.0)
    w, b = params[-1]
    return jnp.tanh(vals @ w + b)


def actor_reference_bf16(params, states):
    """Reference with the same bf16-matmul / f32-epilogue split as the kernel."""
    vals = states.astype(jnp.bfloat16)
    for w, b in params[:-1]:
        y = jnp.dot(vals, w.astype(jnp.bfloat16),
                    preferred_element_type=jnp.float32) + b
        vals = jnp.maximum(y, 0.0).astype(jnp.bfloat16)
    w, b = params[-1]
    y = jnp.dot(vals, w.astype(jnp.bfloat16),
                preferred_element_type=jnp.float32) + b
    return jnp.tanh(y)


if __name__ == "__main__":
    # Small, module-consistent shapes.
    batch = 8
    input_size = 32
    output_size = 8
    hidden_layers = 2
    units = 128

    key = jax.random.PRNGKey(0)
    key, k_states = jax.random.split(key)
    states = jax.random.normal(k_states, (batch, input_size), jnp.float32)

    params = init_actor_params(key, input_size, output_size, hidden_layers, units)

    # One-time prep (outside the per-step jit): bf16 weights, padded last layer.
    prepared, out_size = prepare_actor_params(params)

    out = jax.block_until_ready(
        actor_forward(prepared, states, output_size=out_size))
    assert out.shape == (batch, output_size)

    # Strict check against a reference using the same bf16-on-MXU split.
    ref_bf16 = actor_reference_bf16(params, states)
    assert jnp.allclose(out, ref_bf16, atol=1e-4, rtol=1e-4)

    # Loose check against the full-f32 reference (bf16 matmul rounding).
    ref_f32 = actor_reference_f32(params, states)
    assert jnp.allclose(out, ref_f32, atol=2e-2, rtol=2e-2)

    # Exercise the batch-padding path (batch not a multiple of 8).
    states2 = jax.random.normal(jax.random.PRNGKey(1), (6, input_size), jnp.float32)
    out2 = jax.block_until_ready(
        actor_forward(prepared, states2, output_size=out_size))
    assert out2.shape == (6, output_size)
    assert jnp.allclose(out2, actor_reference_bf16(params, states2),
                        atol=1e-4, rtol=1e-4)

    print("KERNEL_OK")
</pallas_src>

<mosaic_0001>
module attributes {stable_mosaic.version = 11 : i64} {
  func.func @_actor_mlp_kernel(%arg0: i32, %arg1: memref<8x32xf32, #tpu.memory_space<vmem>>, %arg2: memref<32x128xbf16, #tpu.memory_space<vmem>>, %arg3: memref<1x128xf32, #tpu.memory_space<vmem>>, %arg4: memref<128x128xbf16, #tpu.memory_space<vmem>>, %arg5: memref<1x128xf32, #tpu.memory_space<vmem>>, %arg6: memref<128x128xbf16, #tpu.memory_space<vmem>>, %arg7: memref<1x128xf32, #tpu.memory_space<vmem>>, %arg8: memref<8x128xf32, #tpu.memory_space<vmem>>) attributes {dimension_semantics = [#tpu.dimension_semantics<parallel>], iteration_bounds = array<i64: 1>, scalar_prefetch = 0 : i64, scratch_operands = 0 : i64, tpu.core_type = #tpu.core_type<tc>, window_params = [{transform_indices = @transform_0, window_bounds = array<i64: 8, 32>}, {pipeline_mode = #tpu.pipeline_mode<synchronous>, transform_indices = @transform_1, window_bounds = array<i64: 32, 128>}, {pipeline_mode = #tpu.pipeline_mode<synchronous>, transform_indices = @transform_2, window_bounds = array<i64: 1, 128>}, {pipeline_mode = #tpu.pipeline_mode<synchronous>, transform_indices = @transform_3, window_bounds = array<i64: 128, 128>}, {pipeline_mode = #tpu.pipeline_mode<synchronous>, transform_indices = @transform_4, window_bounds = array<i64: 1, 128>}, {pipeline_mode = #tpu.pipeline_mode<synchronous>, transform_indices = @transform_5, window_bounds = array<i64: 128, 128>}, {pipeline_mode = #tpu.pipeline_mode<synchronous>, transform_indices = @transform_6, window_bounds = array<i64: 1, 128>}, {transform_indices = @transform_7, window_bounds = array<i64: 8, 128>}]} {
    %c0 = arith.constant 0 : index
    %c0_0 = arith.constant 0 : index
    %0 = vector.load %arg1[%c0, %c0_0] : memref<8x32xf32, #tpu.memory_space<vmem>>, vector<8x32xf32>
    %1 = arith.truncf %0 : vector<8x32xf32> to vector<8x32xbf16>
    %c0_1 = arith.constant 0 : index
    %c0_2 = arith.constant 0 : index
    %2 = vector.load %arg2[%c0_1, %c0_2] : memref<32x128xbf16, #tpu.memory_space<vmem>>, vector<32x128xbf16>
    %cst = arith.constant dense<0.000000e+00> : vector<8x128xf32>
    %3 = tpu.matmul %1, %2, %cst {dimension_numbers = #tpu.dot_dimension_numbers<[1], [0], [0], [1], [0, 0, 1, 1], [], []>} : vector<8x32xbf16>, vector<32x128xbf16>, vector<8x128xf32> -> vector<8x128xf32>
    %c0_3 = arith.constant 0 : index
    %c0_4 = arith.constant 0 : index
    %4 = vector.load %arg3[%c0_3, %c0_4] : memref<1x128xf32, #tpu.memory_space<vmem>>, vector<1x128xf32>
    %5 = vector.broadcast %4 : vector<1x128xf32> to vector<8x128xf32>
    %6 = arith.addf %3, %5 : vector<8x128xf32>
    %cst_5 = arith.constant 0.000000e+00 : f32
    %7 = vector.broadcast %cst_5 : f32 to vector<8x128xf32>
    %8 = arith.maximumf %6, %7 : vector<8x128xf32>
    %9 = arith.truncf %8 : vector<8x128xf32> to vector<8x128xbf16>
    %c0_6 = arith.constant 0 : index
    %c0_7 = arith.constant 0 : index
    %10 = vector.load %arg4[%c0_6, %c0_7] : memref<128x128xbf16, #tpu.memory_space<vmem>>, vector<128x128xbf16>
    %cst_8 = arith.constant dense<0.000000e+00> : vector<8x128xf32>
    %11 = tpu.matmul %9, %10, %cst_8 {dimension_numbers = #tpu.dot_dimension_numbers<[1], [0], [0], [1], [0, 0, 1, 1], [], []>} : vector<8x128xbf16>, vector<128x128xbf16>, vector<8x128xf32> -> vector<8x128xf32>
    %c0_9 = arith.constant 0 : index
    %c0_10 = arith.constant 0 : index
    %12 = vector.load %arg5[%c0_9, %c0_10] : memref<1x128xf32, #tpu.memory_space<vmem>>, vector<1x128xf32>
    %13 = vector.broadcast %12 : vector<1x128xf32> to vector<8x128xf32>
    %14 = arith.addf %11, %13 : vector<8x128xf32>
    %cst_11 = arith.constant 0.000000e+00 : f32
    %15 = vector.broadcast %cst_11 : f32 to vector<8x128xf32>
    %16 = arith.maximumf %14, %15 : vector<8x128xf32>
    %17 = arith.truncf %16 : vector<8x128xf32> to vector<8x128xbf16>
    %c0_12 = arith.constant 0 : index
    %c0_13 = arith.constant 0 : index
    %18 = vector.load %arg6[%c0_12, %c0_13] : memref<128x128xbf16, #tpu.memory_space<vmem>>, vector<128x128xbf16>
    %cst_14 = arith.constant dense<0.000000e+00> : vector<8x128xf32>
    %19 = tpu.matmul %17, %18, %cst_14 {dimension_numbers = #tpu.dot_dimension_numbers<[1], [0], [0], [1], [0, 0, 1, 1], [], []>} : vector<8x128xbf16>, vector<128x128xbf16>, vector<8x128xf32> -> vector<8x128xf32>
    %c0_15 = arith.constant 0 : index
    %c0_16 = arith.constant 0 : index
    %20 = vector.load %arg7[%c0_15, %c0_16] : memref<1x128xf32, #tpu.memory_space<vmem>>, vector<1x128xf32>
    %21 = vector.broadcast %20 : vector<1x128xf32> to vector<8x128xf32>
    %22 = arith.addf %19, %21 : vector<8x128xf32>
    %23 = math.tanh %22 : vector<8x128xf32>
    %c0_17 = arith.constant 0 : index
    %c0_18 = arith.constant 0 : index
    %24 = vector.load %arg8[%c0_17, %c0_18] : memref<8x128xf32, #tpu.memory_space<vmem>>, vector<8x128xf32>
    tpu.vector_store %arg8[%c0_17, %c0_18], %23 {strides = array<i32>} : memref<8x128xf32, #tpu.memory_space<vmem>>, vector<8x128xf32>,
    return
  }
  func.func @transform_0(%arg0: i32) -> (i32, i32) {
    %c0_i32 = arith.constant 0 : i32
    %c0_i32_0 = arith.constant 0 : i32
    return %arg0, %c0_i32 : i32, i32
  }
  func.func @transform_1(%arg0: i32) -> (i32, i32) {
    %c0_i32 = arith.constant 0 : i32
    %c0_i32_0 = arith.constant 0 : i32
    %c0_i32_1 = arith.constant 0 : i32
    return %c0_i32, %c0_i32_0 : i32, i32
  }
  func.func @transform_2(%arg0: i32) -> (i32, i32) {
    %c0_i32 = arith.constant 0 : i32
    %c0_i32_0 = arith.constant 0 : i32
    %c0_i32_1 = arith.constant 0 : i32
    return %c0_i32, %c0_i32_0 : i32, i32
  }
  func.func @transform_3(%arg0: i32) -> (i32, i32) {
    %c0_i32 = arith.constant 0 : i32
    %c0_i32_0 = arith.constant 0 : i32
    %c0_i32_1 = arith.constant 0 : i32
    return %c0_i32, %c0_i32_0 : i32, i32
  }
  func.func @transform_4(%arg0: i32) -> (i32, i32) {
    %c0_i32 = arith.constant 0 : i32
    %c0_i32_0 = arith.constant 0 : i32
    %c0_i32_1 = arith.constant 0 : i32
    return %c0_i32, %c0_i32_0 : i32, i32
  }
  func.func @transform_5(%arg0: i32) -> (i32, i32) {
    %c0_i32 = arith.constant 0 : i32
    %c0_i32_0 = arith.constant 0 : i32
    %c0_i32_1 = arith.constant 0 : i32
    return %c0_i32, %c0_i32_0 : i32, i32
  }
  func.func @transform_6(%arg0: i32) -> (i32, i32) {
    %c0_i32 = arith.constant 0 : i32
    %c0_i32_0 = arith.constant 0 : i32
    %c0_i32_1 = arith.constant 0 : i32
    return %c0_i32, %c0_i32_0 : i32, i32
  }
  func.func @transform_7(%arg0: i32) -> (i32, i32) {
    %c0_i32 = arith.constant 0 : i32
    %c0_i32_0 = arith.constant 0 : i32
    return %arg0, %c0_i32 : i32, i32
  }
}

</mosaic_0001>

<bundles_post_ra>
// kernel: actor_forward.1
= control target key start
LH: loop header
LB: loop body
LE: loop exit
PB: predicated region body
PF: predicated region fallthrough
CT: control target
= control target key end

     0   :  { %12 = vsyncpa [#allocation3], 0  ;;  %s743_s0 = inlined_call_operand.vmem [shape: f32[8,32], index: 0, kind: input, shape index: {}]   ;;  %s744_s1 = inlined_call_operand.hbm [shape: bf16[32,128], index: 1, kind: input, shape index: {}]   ;;  %s745_s2 = inlined_call_operand.vmem [shape: f32[1,128], index: 2, kind: input, shape index: {}]   ;;  %s746_s3 = inlined_call_operand.hbm [shape: bf16[128,128], index: 3, kind: input, shape index: {}]   ;;  %s747_s4 = inlined_call_operand.vmem [shape: f32[1,128], index: 4, kind: input, shape index: {}]   ;;  %s748_s5 = inlined_call_operand.hbm [shape: bf16[128,128], index: 5, kind: input, shape index: {}]   ;;  %s749_s6 = inlined_call_operand.vmem [shape: f32[1,128], index: 6, kind: input, shape index: {}]   ;;  %s750_s7 = inlined_call_operand.hbm [shape: f32[8,128], index: 7, kind: output, shape index: {}]  }
   0x1   :  { %13 = vsyncpa [#allocation6], 0 }
   0x2   :  { %14 = vsyncpa [#allocation4], 0  ;;  %s595_s24 = smov [#allocation5]   ;;  %s596_s26 = smov [#allocation2]  }
   0x3   :  { %s36_s25 = sshll.u32 %s595_s24, 4  ;;  %s22_s27 = sshll.u32 %s596_s26, 4  ;;  %s37_s25 = int_to_ptr.vmem [resolvable:$true] %s36_s25  ;;  %s643_s27 = int_to_ptr.vmem [resolvable:$true] %s22_s27 }
   0x4   :  { %s501_s30 = scalar_lea.hbm %s746_s3, 1024 }
   0x5   :  { %p502_p0 = scmp.ne.s32.totalorder %s746_s3, %s501_s30  ;;  %p505_p1 = scmp.lt.u32.totalorder %s501_s30, %s746_s3 }
   0x7   :  { %p507_p2 = pnand %p505_p1, %p502_p0 }
   0x9   :  { %510 = shalt.err (!%p507_p2)
}
   0xa   :  { %s511_s12 = scalar_lea.vmem %s37_s25, 1024  ;;  %p516_p4 = scmp.lt.s32.totalorder %s37_s25, %s37_s25 }
   0xb   :  { %p512_p3 = scmp.ne.s32.totalorder %s37_s25, %s511_s12  ;;  %p517_p5 = scmp.lt.s32.totalorder %s511_s12, %s511_s12 }
   0xd   :  { %p518_p6 = por %p517_p5, %p516_p4 }
   0xf   :  { %p519_p7 = pnand %p518_p6, %p512_p3 }
  0x11   :  { %522 = shalt.err (!%p519_p7)
}
  0x12   :  { %s597_s13 = smov 64   ;;  %s598_s14 = smov 4  }
  0x13   :  { %42 = dma.hbm_to_vmem [thread:$0]  %s746_s3, 1024, %s37_s25, [#allocation6], %s597_s13, %s597_s13, %s598_s14  }
  0x14   :  { %s523_s19 = scalar_lea.hbm %s744_s1, 256 }
  0x15   :  { %p524_p8 = scmp.ne.s32.totalorder %s744_s1, %s523_s19  ;;  %p527_p9 = scmp.lt.u32.totalorder %s523_s19, %s744_s1 }
  0x17   :  { %p529_p10 = pnand %p527_p9, %p524_p8 }
  0x19   :  { %532 = shalt.err (!%p529_p10)
}
  0x1a   :  { %s533_s24 = scalar_lea.vmem %s643_s27, 256  ;;  %p538_p12 = scmp.lt.s32.totalorder %s643_s27, %s643_s27 }
  0x1b   :  { %p534_p11 = scmp.ne.s32.totalorder %s643_s27, %s533_s24  ;;  %p539_p13 = scmp.lt.s32.totalorder %s533_s24, %s533_s24 }
  0x1d   :  { %p540_p0 = por %p539_p13, %p538_p12 }
  0x1f   :  { %p541_p1 = pnand %p540_p0, %p534_p11 }
  0x21   :  { %544 = shalt.err (!%p541_p1)
}
  0x22   :  { %28 = dma.hbm_to_vmem [thread:$0]  %s744_s1, 256, %s643_s27, [#allocation3], %s597_s13, %s597_s13, %s598_s14  }
  0x23   :  { %s599_s26 = smov [#allocation7]   ;;  %s545_s8 = scalar_lea.hbm %s748_s5, 1024 }
  0x24   :  { %s50_s28 = sshll.u32 %s599_s26, 4  ;;  %p546_p2 = scmp.ne.s32.totalorder %s748_s5, %s545_s8  ;;  %s51_s28 = int_to_ptr.vmem [resolvable:$true] %s50_s28 }
  0x25   :  { %p549_p3 = scmp.lt.u32.totalorder %s545_s8, %s748_s5 }
  0x27   :  { %p551_p4 = pnand %p549_p3, %p546_p2 }
  0x29   :  { %554 = shalt.err (!%p551_p4)
}
  0x2a   :  { %s555_s15 = scalar_lea.vmem %s51_s28, 1024  ;;  %p560_p6 = scmp.lt.s32.totalorder %s51_s28, %s51_s28 }
  0x2b   :  { %p556_p5 = scmp.ne.s32.totalorder %s51_s28, %s555_s15  ;;  %p561_p7 = scmp.lt.s32.totalorder %s555_s15, %s555_s15 }
  0x2d   :  { %p562_p8 = por %p561_p7, %p560_p6 }
  0x2f   :  { %p563_p9 = pnand %p562_p8, %p556_p5 }
  0x31   :  { %566 = shalt.err (!%p563_p9)
}
  0x32   :  { %56 = dma.hbm_to_vmem [thread:$0]  %s748_s5, 1024, %s51_s28, [#allocation6], %s597_s13, %s597_s13, %s598_s14  }
  0x33   :  { %589 = dma.done.wait [#allocation3], 256  }
  0x34   :  { %590 = vsyncadd [#allocation3], 4294967040 }
  0x35   :  { %591 = dma.done.wait [#allocation6], 2048  }
  0x36   :  { %592 = vsyncadd [#allocation6], 4294965248  ;;  %v600_v0 = vmov 0.0   ;;  %vm601_vm0 = vmmov 0   ;;  %v481_v1 = vld [vmem:[#allocation2] sm:$0xff]   ;;  %v482_v2 = vld [vmem:[#allocation2 + $0x8] sm:$0xff]  }
  0x37   :  { %425 = vmatprep.subr.bf16.mxu0 %v600_v0  ;;  %429 = vmatprep.mubr.msk.bf16.mxu0 %vm601_vm0, %v600_v0  ;;  %v69_v3 = vld [vmem:[%s743_s0] sm:$0xff]  ;;  %v483_v4 = vld [vmem:[#allocation5] sm:$0xff]   ;;  %v484_v6 = vld [vmem:[#allocation5 + $0x8] sm:$0xff]   ;;  %vm94_vm1 = vcmask 261120   ;;  %s602_s19 = smov [#allocation8]  }
  0x38   :  { %433 = vmatprep.subr.bf16.mxu1 %v600_v0  ;;  %449 = vmatprep.mubr.msk.bf16.mxu1 %vm601_vm0, %v600_v0  ;;  %v70_v5 = vpack.c.bf16 %v69_v3, %v69_v3  ;;  %v485_v7 = vld [vmem:[#allocation5 + $0x10] sm:$0xff]   ;;  %v486_v8 = vld [vmem:[#allocation5 + $0x18] sm:$0xff]   ;;  %v487_v9 = vld [vmem:[#allocation5 + $0x20] sm:$0xff]  }
  0x39   :  { %426 = vmatpush3.bf16.msra.mxu0 %v481_v1  ;;  %434 = vmatpush3.bf16.msra.mxu1 %v483_v4  ;;  %v488_v10 = vld [vmem:[#allocation5 + $0x28] sm:$0xff]   ;;  %v489_v11 = vld [vmem:[#allocation5 + $0x30] sm:$0xff]   ;;  %v490_v12 = vld [vmem:[#allocation5 + $0x38] sm:$0xff]  }
  0x3a   :  { %427 = vmatprep.subr.bf16.mxu0 %v600_v0  ;;  %435 = vmatprep.subr.bf16.mxu1 %v600_v0  ;;  %v491_v13 = vld [vmem:[#allocation7] sm:$0xff]   ;;  %v492_v14 = vld [vmem:[#allocation7 + $0x8] sm:$0xff]   ;;  %v493_v15 = vld [vmem:[#allocation7 + $0x10] sm:$0xff]  }
  0x3b   :  { %v494_v16 = vld [vmem:[#allocation7 + $0x18] sm:$0xff]   ;;  %v495_v17 = vld [vmem:[#allocation7 + $0x20] sm:$0xff]   ;;  %v496_v18 = vld [vmem:[#allocation7 + $0x28] sm:$0xff]  }
  0x3c   :  { %v382_v19 = vld [vmem:[%s745_s2] ss:$0 sm:$0xff]  ;;  %v498_v28 = vld [vmem:[#allocation7 + $0x38] sm:$0xff]  }
  0x3d   :  { %428 = vmatpush3.bf16.msra.mxu0 %v482_v2  ;;  %436 = vmatpush3.bf16.msra.mxu1 %v484_v6  ;;  %v497_v27 = vld [vmem:[#allocation7 + $0x30] sm:$0xff]  }
  0x3e   :  { %453 = vmatprep.subr.bf16.mxu0 %v600_v0  ;;  %437 = vmatprep.subr.bf16.mxu1 %v600_v0  ;;  %v386_v29 = vld [vmem:[%s747_s4] ss:$0 sm:$0xff]  ;;  %s372_s4 = sshll.u32 %s602_s19, 4  ;;  %s373_s4 = int_to_ptr.vmem [resolvable:$true] %s372_s4 }
  0x3f   :  { %v395_v37 = vld [vmem:[%s749_s6] ss:$0 sm:$0xff]  ;;  %s567_s20 = scalar_lea.vmem %s373_s4, 128  ;;  %p572_p11 = scmp.lt.s32.totalorder %s373_s4, %s373_s4 }
  0x40   :  { %430 = vmatmul.mubr.msk.bf16.vlgmr.msra.gmra.mrb[0].mxu0 %vm94_vm1, %v70_v5  ;;  %p568_p10 = scmp.ne.s32.totalorder %s373_s4, %s567_s20  ;;  %p573_p12 = scmp.lt.s32.totalorder %s567_s20, %s567_s20 }
  0x41   :  { %469 = vmatprep.mubr.msk.bf16.mxu0 %vm601_vm0, %v600_v0  ;;  %438 = vmatpush3.bf16.msra.mxu1 %v485_v7 }
  0x42   :  { %439 = vmatprep.subr.bf16.mxu1 %v600_v0  ;;  %454 = vmatpush3.bf16.msra.mxu0 %v491_v13  ;;  %p574_p13 = por %p573_p12, %p572_p11 }
  0x43   :  { %455 = vmatprep.subr.bf16.mxu0 %v600_v0 }
  0x44   :  { %p575_p0 = pnand %p574_p13, %p568_p10 }
  0x45   :  { %440 = vmatpush3.bf16.msra.mxu1 %v486_v8 }
  0x46   :  { %441 = vmatprep.subr.bf16.mxu1 %v600_v0  ;;  %456 = vmatpush3.bf16.msra.mxu0 %v492_v14 }
  0x47   :  { %457 = vmatprep.subr.bf16.mxu0 %v600_v0 }
  0x49   :  { %442 = vmatpush3.bf16.msra.mxu1 %v487_v9 }
  0x4a   :  { %443 = vmatprep.subr.bf16.mxu1 %v600_v0  ;;  %458 = vmatpush3.bf16.msra.mxu0 %v493_v15 }
  0x4b   :  { %459 = vmatprep.subr.bf16.mxu0 %v600_v0 }
  0x4d   :  { %444 = vmatpush3.bf16.msra.mxu1 %v488_v10 }
  0x4e   :  { %445 = vmatprep.subr.bf16.mxu1 %v600_v0  ;;  %460 = vmatpush3.bf16.msra.mxu0 %v494_v16 }
  0x4f   :  { %461 = vmatprep.subr.bf16.mxu0 %v600_v0 }
  0x51   :  { %446 = vmatpush3.bf16.msra.mxu1 %v489_v11 }
  0x52   :  { %447 = vmatprep.subr.bf16.mxu1 %v600_v0  ;;  %462 = vmatpush3.bf16.msra.mxu0 %v495_v17 }
  0x53   :  { %463 = vmatprep.subr.bf16.mxu0 %v600_v0 }
  0x55   :  { %448 = vmatpush3.bf16.msra.mxu1 %v490_v12 }
  0x56   :  { %464 = vmatpush3.bf16.msra.mxu0 %v496_v18 }
  0x57   :  { %465 = vmatprep.subr.bf16.mxu0 %v600_v0 }
  0x5a   :  { %466 = vmatpush3.bf16.msra.mxu0 %v497_v27 }
  0x5b   :  { %467 = vmatprep.subr.bf16.mxu0 %v600_v0 }
  0x5e   :  { %468 = vmatpush3.bf16.msra.mxu0 %v498_v28 }
 0x113   :  { %v132_v20 = vpop.f32.mrb[0].mxu0 }
 0x114   :  { %v133_v21 = vadd.f32 %v382_v19, %v132_v20  ;;  %v431_v22 = vpop.f32.mrb[1].mxu0 }
 0x115   :  { %v135_v23 = vpop.f32.mrb[2].mxu0 }
 0x116   :  { %v138_v24 = vmax.f32 %v133_v21, 0.0  ;;  %v432_v25 = vpop.f32.mrb[3].mxu0 }
 0x118   :  { %v139_v26 = vpack.c.bf16 %v138_v24, %v138_v24 }
 0x11a   :  { %450 = vmatmul.mubr.bf16.vlgmr.msra.gmra.mrb[0].mxu1 %v139_v26 }
 0x1ed   :  { %v245_v30 = vpop.f32.mrb[0].mxu1 }
 0x1ee   :  { %v246_v31 = vadd.f32 %v386_v29, %v245_v30  ;;  %v451_v32 = vpop.f32.mrb[1].mxu1 }
 0x1ef   :  { %v248_v33 = vpop.f32.mrb[2].mxu1 }
 0x1f0   :  { %v251_v34 = vmax.f32 %v246_v31, 0.0  ;;  %v452_v35 = vpop.f32.mrb[3].mxu1 }
 0x1f2   :  { %v252_v36 = vpack.c.bf16 %v251_v34, %v251_v34 }
 0x1f4   :  { %470 = vmatmul.mubr.bf16.vlgmr.msra.gmra.mrb[4].mxu0 %v252_v36 }
 0x2c7   :  { %v358_v38 = vpop.f32.mrb[4].mxu0 }
 0x2c8   :  { %v359_v39 = vadd.f32 %v395_v37, %v358_v38  ;;  %v471_v40 = vpop.f32.mrb[5].mxu0 }
 0x2c9   :  { %v361_v41 = vpop.f32.mrb[6].mxu0 }
 0x2ca   :  { %499 = vtanh.f32 %v359_v39  ;;  %v472_v42 = vpop.f32.mrb[7].mxu0 }
 0x2d4   :  { %v500_v43 = vpop.eup %499 }
 0x2d5   :  { %365 = vst [vmem:[#allocation8] sm:$0xff] %v500_v43 }
 0x2d6   :  { %578 = shalt.err (!%p575_p0)
}
 0x2d7   :  { %s579_s22 = scalar_lea.hbm %s750_s7, 128 }
 0x2d8   :  { %p580_p1 = scmp.ne.s32.totalorder %s750_s7, %s579_s22  ;;  %p583_p2 = scmp.lt.u32.totalorder %s579_s22, %s750_s7 }
 0x2da   :  { %p585_p3 = pnand %p583_p2, %p580_p1 }
 0x2dc   :  { %588 = shalt.err (!%p585_p3)
}
 0x2dd   :  { %375 = dma.vmem_to_hbm [thread:$0]  %s373_s4, 128, %s750_s7, [#allocation4]  }
 0x2de   :  { %593 = dma.done.wait [#allocation4], 128  }
 0x2df   :  { %594 = vsyncadd [#allocation4], 4294967168 }
 0x2e0   :  { %379 = vsyncpa [#allocation3], 1 }
 0x2e1   :  { %380 = vsyncpa [#allocation6], 1 }
 0x2e2   :  { %381 = vsyncpa [#allocation4], 1 }

</bundles_post_ra>
